<compile_context>
chip_gen: v6e
topology: v6e:2x2x1
jax: 0.10.0
libtpu: 0.0.40
codegen_flags: <defaults>
</compile_context>

<pallas_src>
import functools

import jax
import jax.numpy as jnp
from jax.experimental import pallas as pl
from jax.experimental.pallas import tpu as pltpu


def _moco_loss_kernel(q_ref, k_ref, loss_ref, qk_acc, kk_acc, qsq_acc, *,
                      td, d_total, batch, temperature, eps):
    d = pl.program_id(0)

    @pl.when(d == 0)
    def _init():
        qk_acc[...] = jnp.zeros_like(qk_acc)
        kk_acc[...] = jnp.zeros_like(kk_acc)
        qsq_acc[...] = jnp.zeros_like(qsq_acc)
        loss_ref[...] = jnp.zeros_like(loss_ref)

    q = q_ref[...].astype(jnp.float32)          # (B, td)
    k = k_ref[...].astype(jnp.float32)          # (B, td)

    if d_total % td != 0:
        # Only the last tile is ragged: zero out-of-range lanes so they add
        # nothing to the dot products / squared norms.
        col = jax.lax.broadcasted_iota(jnp.int32, (batch, td), 1) + d * td
        valid = col < d_total
        q = jnp.where(valid, q, 0.0)
        k = jnp.where(valid, k, 0.0)

    contract_last = (((1,), (1,)), ((), ()))    # A @ B^T on the MXU
    qk_acc[...] += jax.lax.dot_general(q, k, contract_last,
                                       preferred_element_type=jnp.float32)
    kk_acc[...] += jax.lax.dot_general(k, k, contract_last,
                                       preferred_element_type=jnp.float32)
    qsq_acc[...] += jnp.sum(q * q, axis=1, keepdims=True)          # (B, 1)

    @pl.when(d == pl.num_programs(0) - 1)
    def _epilogue():
        ri = jax.lax.broadcasted_iota(jnp.int32, (batch, batch), 0)
        ci = jax.lax.broadcasted_iota(jnp.int32, (batch, batch), 1)
        is_diag = ri == ci

        # ||k_j||^2 already lane-major via diag(k @ k^T): no transpose needed.
        ksq_row = jnp.sum(jnp.where(is_diag, kk_acc[...], 0.0),
                          axis=0, keepdims=True)                   # (1, B)
        nq = jnp.sqrt(qsq_acc[...])                                # (B, 1)
        nk = jnp.sqrt(ksq_row)                                     # (1, B)

        # torch F.cosine_similarity: x1.x2 / max(||x1|| * ||x2||, eps)
        denom = jnp.maximum(nq * nk, eps)                          # (B, B)
        s = (qk_acc[...] / denom) * (1.0 / temperature)            # l_neg / T

        pos = jnp.sum(jnp.where(is_diag, s, 0.0),
                      axis=1, keepdims=True)                       # l_pos / T, (B,1)

        # out_i = [pos_i, s_i0, ..., s_i(B-1)]; CE(target=0), mean over rows.
        m = jnp.maximum(jnp.max(s, axis=1, keepdims=True), pos)    # (B, 1)
        sum_exp = (jnp.sum(jnp.exp(s - m), axis=1, keepdims=True)
                   + jnp.exp(pos - m))
        per_row = m - pos + jnp.log(sum_exp)                       # (B, 1)
        loss_ref[...] = jnp.sum(per_row, axis=0, keepdims=True) * (1.0 / batch)


def moco_loss_list(feat_q, feat_k, idx=None, *, temperature=0.07, eps=1e-8,
                   block_d=2048):
    """Pallas equivalent of MocoLoss_list()(feat_q, feat_k, idx) on the
    queue-empty path.  `idx` is accepted for signature parity but is unused by
    the reference loss computation."""
    del idx
    assert feat_q.shape == feat_k.shape, (feat_q.shape, feat_k.shape)
    batch = feat_q.shape[0]
    # Contiguous dim-merge only: no extra HBM pass (no transpose, no pad).
    q = feat_q.reshape(batch, -1)
    k = feat_k.reshape(batch, -1)
    d_total = q.shape[1]

    # Large lane-dense D tiles to amortize the ~0.35us per-grid-step overhead,
    # clamped so a single tile covers small feature sizes.
    td = min(block_d, pl.cdiv(d_total, 128) * 128)
    grid_d = pl.cdiv(d_total, td)

    kernel = functools.partial(
        _moco_loss_kernel, td=td, d_total=d_total, batch=batch,
        temperature=float(temperature), eps=float(eps))

    out = pl.pallas_call(
        kernel,
        out_shape=jax.ShapeDtypeStruct((1, 1), jnp.float32),
        grid_spec=pltpu.PrefetchScalarGridSpec(
            num_scalar_prefetch=0,
            grid=(grid_d,),
            in_specs=[pl.BlockSpec((batch, td), lambda i: (0, i)),
                      pl.BlockSpec((batch, td), lambda i: (0, i))],
            out_specs=pl.BlockSpec((1, 1), lambda i: (0, 0)),
            scratch_shapes=[pltpu.VMEM((batch, batch), jnp.float32),
                            pltpu.VMEM((batch, batch), jnp.float32),
                            pltpu.VMEM((batch, 1), jnp.float32)],
        ),
        compiler_params=pltpu.CompilerParams(
            # D is a reduction axis feeding resident VMEM accumulators.
            dimension_semantics=("arbitrary",),
        ),
    )(q, k)

    # TODO(synk): the PyTorch module also mutates python-side state
    # (self.queue append/pop of feat_k and the K>0 branch that concatenates
    # the queue as extra negatives); that stateful queue cannot live inside a
    # pure Pallas kernel and must be handled by the caller.
    return out[0, 0]


def _reference(feat_q, feat_k, temperature=0.07, eps=1e-8):
    """Pure-JAX transcription of the PyTorch forward (queue-empty path)."""
    b = feat_q.shape[0]
    q = feat_q.reshape(b, -1).astype(jnp.float32)
    k = feat_k.reshape(b, -1).astype(jnp.float32)
    nq = jnp.sqrt(jnp.sum(q * q, axis=1, keepdims=True))          # (B, 1)
    nk = jnp.sqrt(jnp.sum(k * k, axis=1, keepdims=True))          # (B, 1)
    # Elementwise multiply + sum (like F.cosine_similarity), avoids any
    # XLA matmul-precision ambiguity in the reference.
    dots = jnp.sum(q[:, None, :] * k[None, :, :], axis=-1)        # (B, B)
    l_neg = dots / jnp.maximum(nq * nk.T, eps)                    # (B, B)
    l_pos = jnp.diagonal(l_neg)[:, None]                          # (B, 1)
    out = jnp.concatenate([l_pos, l_neg], axis=1) / temperature   # (B, 1+B)
    m = jnp.max(out, axis=1, keepdims=True)
    lse = jnp.log(jnp.sum(jnp.exp(out - m), axis=1)) + m[:, 0]
    return jnp.mean(lse - out[:, 0])


if __name__ == "__main__":
    key = jax.random.PRNGKey(0)
    key_q, key_k = jax.random.split(key)
    # feat_q / feat_k: (batch=8, channels=32, 4, 4) -> flattened feature dim 512.
    feat_q = jax.random.normal(key_q, (8, 32, 4, 4), dtype=jnp.float32)
    feat_k = jax.random.normal(key_k, (8, 32, 4, 4), dtype=jnp.float32)
    idx = jnp.arange(8, dtype=jnp.int32)   # unused by the loss, kept for parity

    loss = moco_loss_list(feat_q, feat_k, idx)
    loss = jax.block_until_ready(loss)

    ref = _reference(feat_q, feat_k)
    # Modest tolerance: MXU f32 accumulation order can differ slightly from
    # the elementwise reference.
    assert jnp.allclose(loss, ref, rtol=1e-3, atol=1e-3), (loss, ref)

    print("KERNEL_OK")
</pallas_src>

<mosaic_0001>
module attributes {stable_mosaic.version = 11 : i64} {
  func.func @_moco_loss_kernel(%arg0: i32, %arg1: memref<8x512xf32, #tpu.memory_space<vmem>>, %arg2: memref<8x512xf32, #tpu.memory_space<vmem>>, %arg3: memref<1x1xf32, #tpu.memory_space<vmem>>, %arg4: memref<8x8xf32, #tpu.memory_space<vmem>>, %arg5: memref<8x8xf32, #tpu.memory_space<vmem>>, %arg6: memref<8x1xf32, #tpu.memory_space<vmem>>) attributes {dimension_semantics = [#tpu.dimension_semantics<arbitrary>], iteration_bounds = array<i64: 1>, scalar_prefetch = 0 : i64, scratch_operands = 3 : i64, tpu.core_type = #tpu.core_type<tc>, window_params = [{transform_indices = @transform_0, window_bounds = array<i64: 8, 512>}, {transform_indices = @transform_1, window_bounds = array<i64: 8, 512>}, {pipeline_mode = #tpu.pipeline_mode<synchronous>, transform_indices = @transform_2, window_bounds = array<i64: 1, 1>}]} {
    %c0_i32 = arith.constant 0 : i32
    %0 = arith.cmpi eq, %arg0, %c0_i32 : i32
    %1 = arith.extui %0 : i1 to i32
    %c0_i32_0 = arith.constant 0 : i32
    %2 = arith.cmpi ne, %1, %c0_i32_0 : i32
    scf.if %2 {
      %cst_20 = arith.constant 0.000000e+00 : f32
      %22 = vector.broadcast %cst_20 : f32 to vector<8x8xf32>
      %c0_21 = arith.constant 0 : index
      %c0_22 = arith.constant 0 : index
      %23 = vector.load %arg4[%c0_21, %c0_22] : memref<8x8xf32, #tpu.memory_space<vmem>>, vector<8x8xf32>
      tpu.vector_store %arg4[%c0_21, %c0_22], %22 {strides = array<i32>} : memref<8x8xf32, #tpu.memory_space<vmem>>, vector<8x8xf32>,
      %cst_23 = arith.constant 0.000000e+00 : f32
      %24 = vector.broadcast %cst_23 : f32 to vector<8x8xf32>
      %c0_24 = arith.constant 0 : index
      %c0_25 = arith.constant 0 : index
      %25 = vector.load %arg5[%c0_24, %c0_25] : memref<8x8xf32, #tpu.memory_space<vmem>>, vector<8x8xf32>
      tpu.vector_store %arg5[%c0_24, %c0_25], %24 {strides = array<i32>} : memref<8x8xf32, #tpu.memory_space<vmem>>, vector<8x8xf32>,
      %cst_26 = arith.constant 0.000000e+00 : f32
      %26 = vector.broadcast %cst_26 : f32 to vector<8x1xf32>
      %c0_27 = arith.constant 0 : index
      %c0_28 = arith.constant 0 : index
      %27 = vector.load %arg6[%c0_27, %c0_28] : memref<8x1xf32, #tpu.memory_space<vmem>>, vector<8x1xf32>
      tpu.vector_store %arg6[%c0_27, %c0_28], %26 {strides = array<i32>} : memref<8x1xf32, #tpu.memory_space<vmem>>, vector<8x1xf32>,
      %cst_29 = arith.constant 0.000000e+00 : f32
      %28 = vector.broadcast %cst_29 : f32 to vector<1x1xf32>
      %c0_30 = arith.constant 0 : index
      %c0_31 = arith.constant 0 : index
      %29 = vector.load %arg3[%c0_30, %c0_31] : memref<1x1xf32, #tpu.memory_space<vmem>>, vector<1x1xf32>
      tpu.vector_store %arg3[%c0_30, %c0_31], %28 {strides = array<i32>} : memref<1x1xf32, #tpu.memory_space<vmem>>, vector<1x1xf32>,
    } else {
    }
    %c0 = arith.constant 0 : index
    %c0_1 = arith.constant 0 : index
    %3 = vector.load %arg1[%c0, %c0_1] : memref<8x512xf32, #tpu.memory_space<vmem>>, vector<8x512xf32>
    %c0_2 = arith.constant 0 : index
    %c0_3 = arith.constant 0 : index
    %4 = vector.load %arg2[%c0_2, %c0_3] : memref<8x512xf32, #tpu.memory_space<vmem>>, vector<8x512xf32>
    %c0_4 = arith.constant 0 : index
    %c0_5 = arith.constant 0 : index
    %5 = vector.load %arg4[%c0_4, %c0_5] : memref<8x8xf32, #tpu.memory_space<vmem>>, vector<8x8xf32>
    %cst = arith.constant dense<0.000000e+00> : vector<8x8xf32>
    %6 = tpu.matmul %3, %4, %cst {dimension_numbers = #tpu.dot_dimension_numbers<[1], [1], [0], [0], [0, 0, 1, 0], [], []>} : vector<8x512xf32>, vector<8x512xf32>, vector<8x8xf32> -> vector<8x8xf32>
    %7 = arith.addf %5, %6 : vector<8x8xf32>
    %c0_6 = arith.constant 0 : index
    %c0_7 = arith.constant 0 : index
    %8 = vector.load %arg4[%c0_6, %c0_7] : memref<8x8xf32, #tpu.memory_space<vmem>>, vector<8x8xf32>
    tpu.vector_store %arg4[%c0_6, %c0_7], %7 {strides = array<i32>} : memref<8x8xf32, #tpu.memory_space<vmem>>, vector<8x8xf32>,
    %c0_8 = arith.constant 0 : index
    %c0_9 = arith.constant 0 : index
    %9 = vector.load %arg5[%c0_8, %c0_9] : memref<8x8xf32, #tpu.memory_space<vmem>>, vector<8x8xf32>
    %cst_10 = arith.constant dense<0.000000e+00> : vector<8x8xf32>
    %10 = tpu.matmul %4, %4, %cst_10 {dimension_numbers = #tpu.dot_dimension_numbers<[1], [1], [0], [0], [0, 0, 1, 0], [], []>} : vector<8x512xf32>, vector<8x512xf32>, vector<8x8xf32> -> vector<8x8xf32>
    %11 = arith.addf %9, %10 : vector<8x8xf32>
    %c0_11 = arith.constant 0 : index
    %c0_12 = arith.constant 0 : index
    %12 = vector.load %arg5[%c0_11, %c0_12] : memref<8x8xf32, #tpu.memory_space<vmem>>, vector<8x8xf32>
    tpu.vector_store %arg5[%c0_11, %c0_12], %11 {strides = array<i32>} : memref<8x8xf32, #tpu.memory_space<vmem>>, vector<8x8xf32>,
    %c0_13 = arith.constant 0 : index
    %c0_14 = arith.constant 0 : index
    %13 = vector.load %arg6[%c0_13, %c0_14] : memref<8x1xf32, #tpu.memory_space<vmem>>, vector<8x1xf32>
    %14 = arith.mulf %3, %3 : vector<8x512xf32>
    %cst_15 = arith.constant dense<0.000000e+00> : vector<8xf32>
    %15 = vector.multi_reduction <add>, %14, %cst_15 [1] : vector<8x512xf32> to vector<8xf32>
    %16 = vector.shape_cast %15 : vector<8xf32> to vector<8x1xf32>
    %17 = arith.addf %13, %16 : vector<8x1xf32>
    %c0_16 = arith.constant 0 : index
    %c0_17 = arith.constant 0 : index
    %18 = vector.load %arg6[%c0_16, %c0_17] : memref<8x1xf32, #tpu.memory_space<vmem>>, vector<8x1xf32>
    tpu.vector_store %arg6[%c0_16, %c0_17], %17 {strides = array<i32>} : memref<8x1xf32, #tpu.memory_space<vmem>>, vector<8x1xf32>,
    %c0_i32_18 = arith.constant 0 : i32
    %19 = arith.cmpi eq, %arg0, %c0_i32_18 : i32
    %20 = arith.extui %19 : i1 to i32
    %c0_i32_19 = arith.constant 0 : i32
    %21 = arith.cmpi ne, %20, %c0_i32_19 : i32
    scf.if %21 {
      %22 = tpu.iota {dimensions = array<i32: 0>} : vector<8x8xi32>
      %23 = tpu.iota {dimensions = array<i32: 1>} : vector<8x8xi32>
      %24 = arith.cmpi eq, %22, %23 : vector<8x8xi32>
      %c0_20 = arith.constant 0 : index
      %c0_21 = arith.constant 0 : index
      %25 = vector.load %arg5[%c0_20, %c0_21] : memref<8x8xf32, #tpu.memory_space<vmem>>, vector<8x8xf32>
      %cst_22 = arith.constant 0.000000e+00 : f32
      %26 = vector.broadcast %cst_22 : f32 to vector<8x8xf32>
      %27 = arith.select %24, %25, %26 : vector<8x8xi1>, vector<8x8xf32>
      %cst_23 = arith.constant dense<0.000000e+00> : vector<8xf32>
      %28 = vector.multi_reduction <add>, %27, %cst_23 [0] : vector<8x8xf32> to vector<8xf32>
      %29 = vector.shape_cast %28 : vector<8xf32> to vector<1x8xf32>
      %c0_24 = arith.constant 0 : index
      %c0_25 = arith.constant 0 : index
      %30 = vector.load %arg6[%c0_24, %c0_25] : memref<8x1xf32, #tpu.memory_space<vmem>>, vector<8x1xf32>
      %31 = math.sqrt %30 : vector<8x1xf32>
      %32 = math.sqrt %29 : vector<1x8xf32>
      %33 = vector.broadcast %31 : vector<8x1xf32> to vector<8x8xf32>
      %34 = vector.broadcast %32 : vector<1x8xf32> to vector<8x8xf32>
      %35 = arith.mulf %33, %34 : vector<8x8xf32>
      %cst_26 = arith.constant 9.99999993E-9 : f32
      %36 = vector.broadcast %cst_26 : f32 to vector<8x8xf32>
      %37 = arith.maximumf %35, %36 : vector<8x8xf32>
      %c0_27 = arith.constant 0 : index
      %c0_28 = arith.constant 0 : index
      %38 = vector.load %arg4[%c0_27, %c0_28] : memref<8x8xf32, #tpu.memory_space<vmem>>, vector<8x8xf32>
      %39 = arith.divf %38, %37 : vector<8x8xf32>
      %cst_29 = arith.constant 14.2857141 : f32
      %40 = vector.broadcast %cst_29 : f32 to vector<8x8xf32>
      %41 = arith.mulf %39, %40 : vector<8x8xf32>
      %cst_30 = arith.constant 0.000000e+00 : f32
      %42 = vector.broadcast %cst_30 : f32 to vector<8x8xf32>
      %43 = arith.select %24, %41, %42 : vector<8x8xi1>, vector<8x8xf32>
      %cst_31 = arith.constant dense<0.000000e+00> : vector<8xf32>
      %44 = vector.multi_reduction <add>, %43, %cst_31 [1] : vector<8x8xf32> to vector<8xf32>
      %45 = vector.shape_cast %44 : vector<8xf32> to vector<8x1xf32>
      %cst_32 = arith.constant dense<0xFF800000> : vector<8xf32>
      %46 = vector.multi_reduction <maximumf>, %41, %cst_32 [1] : vector<8x8xf32> to vector<8xf32>
      %47 = vector.shape_cast %46 : vector<8xf32> to vector<8x1xf32>
      %48 = arith.maximumf %47, %45 : vector<8x1xf32>
      %49 = vector.broadcast %48 : vector<8x1xf32> to vector<8x8xf32>
      %50 = arith.subf %41, %49 : vector<8x8xf32>
      %51 = math.exp %50 : vector<8x8xf32>
      %cst_33 = arith.constant dense<0.000000e+00> : vector<8xf32>
      %52 = vector.multi_reduction <add>, %51, %cst_33 [1] : vector<8x8xf32> to vector<8xf32>
      %53 = vector.shape_cast %52 : vector<8xf32> to vector<8x1xf32>
      %54 = arith.subf %45, %48 : vector<8x1xf32>
      %55 = math.exp %54 : vector<8x1xf32>
      %56 = arith.addf %53, %55 : vector<8x1xf32>
      %57 = arith.subf %48, %45 : vector<8x1xf32>
      %58 = math.log %56 : vector<8x1xf32>
      %59 = arith.addf %57, %58 : vector<8x1xf32>
      %cst_34 = arith.constant dense<0.000000e+00> : vector<1xf32>
      %60 = vector.multi_reduction <add>, %59, %cst_34 [0] : vector<8x1xf32> to vector<1xf32>
      %61 = vector.shape_cast %60 : vector<1xf32> to vector<1x1xf32>
      %cst_35 = arith.constant 1.250000e-01 : f32
      %62 = vector.broadcast %cst_35 : f32 to vector<1x1xf32>
      %63 = arith.mulf %61, %62 : vector<1x1xf32>
      %c0_36 = arith.constant 0 : index
      %c0_37 = arith.constant 0 : index
      %64 = vector.load %arg3[%c0_36, %c0_37] : memref<1x1xf32, #tpu.memory_space<vmem>>, vector<1x1xf32>
      tpu.vector_store %arg3[%c0_36, %c0_37], %63 {strides = array<i32>} : memref<1x1xf32, #tpu.memory_space<vmem>>, vector<1x1xf32>,
    } else {
    }
    return
  }
  func.func @transform_0(%arg0: i32) -> (i32, i32) {
    %c0_i32 = arith.constant 0 : i32
    %c0_i32_0 = arith.constant 0 : i32
    return %c0_i32, %arg0 : i32, i32
  }
  func.func @transform_1(%arg0: i32) -> (i32, i32) {
    %c0_i32 = arith.constant 0 : i32
    %c0_i32_0 = arith.constant 0 : i32
    return %c0_i32, %arg0 : i32, i32
  }
  func.func @transform_2(%arg0: i32) -> (i32, i32) {
    %c0_i32 = arith.constant 0 : i32
    %c0_i32_0 = arith.constant 0 : i32
    %c0_i32_1 = arith.constant 0 : i32
    return %c0_i32, %c0_i32_0 : i32, i32
  }
}

</mosaic_0001>

<bundles_post_ra>
// kernel: tpu_custom_call.1
= control target key start
LH: loop header
LB: loop body
LE: loop exit
PB: predicated region body
PF: predicated region fallthrough
CT: control target
= control target key end

     0   :  { %7 = vsyncpa [#allocation6], 0  ;;  %s576_s0 = inlined_call_operand.hbm [shape: f32[8,512], index: 0, kind: input, shape index: {}]   ;;  %s577_s1 = inlined_call_operand.hbm [shape: f32[8,512], index: 1, kind: input, shape index: {}]   ;;  %s578_s2 = inlined_call_operand.hbm [shape: f32[1,1], index: 2, kind: output, shape index: {}]  }
   0x1   :  { %8 = vsyncpa [#allocation9], 0 }
   0x2   :  { %9 = vsyncpa [#allocation7], 0  ;;  %s529_s9 = smov [#allocation5]   ;;  %s530_s11 = smov [#allocation8]  }
   0x3   :  { %s16_s10 = sshll.u32 %s529_s9, 4  ;;  %s26_s12 = sshll.u32 %s530_s11, 4  ;;  %s17_s10 = int_to_ptr.vmem [resolvable:$true] %s16_s10  ;;  %s27_s12 = int_to_ptr.vmem [resolvable:$true] %s26_s12 }
   0x4   :  { %s471_s13 = scalar_lea.vmem %s17_s10, 512  ;;  %p476_p1 = scmp.lt.s32.totalorder %s17_s10, %s17_s10 }
   0x5   :  { %p472_p0 = scmp.ne.s32.totalorder %s17_s10, %s471_s13  ;;  %p477_p2 = scmp.lt.s32.totalorder %s471_s13, %s471_s13 }
   0x7   :  { %p478_p3 = por %p477_p2, %p476_p1 }
   0x9   :  { %p479_p4 = pnand %p478_p3, %p472_p0 }
   0xb   :  { %482 = shalt.err (!%p479_p4)
}
   0xc   :  { %19 = dma.hbm_to_vmem [thread:$0]  %s576_s0, 512, %s17_s10, [#allocation6]  }
   0xd   :  { %s491_s16 = scalar_lea.vmem %s27_s12, 512  ;;  %p496_p6 = scmp.lt.s32.totalorder %s27_s12, %s27_s12 }
   0xe   :  { %p492_p5 = scmp.ne.s32.totalorder %s27_s12, %s491_s16  ;;  %p497_p7 = scmp.lt.s32.totalorder %s491_s16, %s491_s16 }
  0x10   :  { %p498_p8 = por %p497_p7, %p496_p6 }
  0x12   :  { %p499_p9 = pnand %p498_p8, %p492_p5 }
  0x14   :  { %502 = shalt.err (!%p499_p9)
}
  0x15   :  { %29 = dma.hbm_to_vmem [thread:$0]  %s577_s1, 512, %s27_s12, [#allocation9]  }
  0x16   :  { %523 = dma.done.wait [#allocation6], 512  }
  0x17   :  { %524 = vsyncadd [#allocation6], 4294966784 }
  0x18   :  { %525 = dma.done.wait [#allocation9], 512  }
  0x19   :  { %526 = vsyncadd [#allocation9], 4294966784  ;;  %vm43_vm0 = vcmask 7168   ;;  %v531_v0 = vmov 0.0   ;;  %v47_v1 = vld [vmem:[#allocation5] sm:$0xff]  ;;  %v48_v2 = vld [vmem:[#allocation5 + $0x8] sm:$0xff]  ;;  %v358_v40 = vlaneseq }
  0x1a   :  { %44 = vst.msk [vmem:[#allocation4] sm:$0xff] %vm43_vm0, %v531_v0  ;;  %v49_v3 = vld [vmem:[#allocation5 + $0x10] sm:$0xff]  ;;  %v50_v4 = vld [vmem:[#allocation5 + $0x18] sm:$0xff]  ;;  %v343_v5 = vmul.f32 %v47_v1, %v47_v1  ;;  %v344_v6 = vmul.f32 %v48_v2, %v48_v2  ;;  %v52_v8 = vld [vmem:[#allocation8 + $0x8] sm:$0xff]  ;;  %120 = vmatprep.mubr.f32.mxu0 %v48_v2  ;;  %v532_v16 = vmov 0   ;;  %vm40_vm1 = vcmask 64512  }
  0x1b   :  { %v345_v7 = vmul.f32 %v49_v3, %v49_v3  ;;  %v54_v9 = vld [vmem:[#allocation8 + $0x18] sm:$0xff]  ;;  %86 = vmatprep.subr.mxu0 %v52_v8  ;;  %v51_v10 = vld [vmem:[#allocation8] sm:$0xff]  ;;  %v53_v11 = vld [vmem:[#allocation8 + $0x10] sm:$0xff]  ;;  %v346_v12 = vmul.f32 %v50_v4, %v50_v4  ;;  %190 = vmatprep.mubr.f32.mxu1 %v50_v4  ;;  %41 = vst.msk [vmem:[#allocation2] sm:$0xff] %vm40_vm1, %v531_v0  ;;  %v359_v41 = vshrl.u32 %v358_v40, 7  ;;  %v361_v42 = vand.u32 127, %v358_v40 }
  0x1c   :  { %156 = vmatprep.subr.mxu1 %v54_v9  ;;  %v347_v13 = vadd.f32 %v344_v6, %v343_v5  ;;  %87 = vmatpush1.xpose.msra.mxu0 %v51_v10  ;;  %42 = vst.msk [vmem:[#allocation3] sm:$0xff] %vm40_vm1, %v531_v0  ;;  %vm45_vm7 = vcmask 0   ;;  %s533_s0 = smov [#allocation10]  }
  0x1d   :  { %157 = vmatpush1.xpose.msra.mxu1 %v53_v11  ;;  %230 = vmatprep.subr.mxu0 %v52_v8  ;;  %vm362_vm4 = vcmp.eq.s32.totalorder %v359_v41, %v361_v42  ;;  %46 = vst.msk [vmem:[#allocation10] sm:$0x1] %vm45_vm7, %v531_v0  ;;  %s435_s1 = sshll.u32 %s533_s0, 4  ;;  %s436_s1 = int_to_ptr.vmem [resolvable:$true] %s435_s1 }
  0x1e   :  { %v348_v14 = vadd.f32 %v347_v13, %v345_v7  ;;  %300 = vmatprep.subr.mxu1 %v54_v9  ;;  %450 = vset.pattern.permute.xlu0 %v532_v16  ;;  %s503_s19 = scalar_lea.vmem %s436_s1, 16  ;;  %s507_s20 = scalar_lea.vmem %s436_s1, 32 }
  0x1f   :  { %121 = vmatmul.mubr.f32.vlgmr.msra.gmra.mxu0 %v47_v1  ;;  %p504_p10 = scmp.ne.s32.totalorder %s436_s1, %s503_s19  ;;  %p508_p11 = scmp.lt.s32.totalorder %s436_s1, %s436_s1 }
  0x20   :  { %191 = vmatmul.mubr.f32.vlgmr.msra.gmra.mxu1 %v49_v3  ;;  %v349_v15 = vadd.f32 %v348_v14, %v346_v12  ;;  %231 = vmatpush1.xpose.msra.mxu0 %v51_v10  ;;  %p509_p12 = scmp.lt.s32.totalorder %s507_s20, %s503_s19 }
  0x21   :  { %301 = vmatpush1.xpose.msra.mxu1 %v53_v11  ;;  %264 = vmatprep.mubr.f32.mxu0 %v52_v8  ;;  %v342_v17 = vld [vmem:[#allocation4] sm:$0xff] }
  0x22   :  { %334 = vmatprep.mubr.f32.mxu1 %v54_v9  ;;  %350 = vadd.xlane.f32.xlu0 %v349_v15  ;;  %v55_v27 = vld [vmem:[#allocation2] sm:$0xff]  ;;  %p510_p13 = por %p509_p12, %p508_p11 }
  0x23   :  { %265 = vmatmul.mubr.f32.vlgmr.msra.gmra.mxu0 %v51_v10  ;;  %v199_v34 = vld [vmem:[#allocation3] sm:$0xff] }
  0x24   :  { %335 = vmatmul.mubr.f32.vlgmr.msra.gmra.mxu1 %v53_v11  ;;  %p511_p0 = pnand %p510_p13, %p504_p10 }
  0xab   :  { %v351_v18 = vpop.xlane.xlu0 %350 }
  0xac   :  { %v352_v19 = vadd.f32 %v351_v18, %v342_v17 }
  0xae   :  { %354 = vst.msk [vmem:[#allocation4] sm:$0xff] %vm43_vm0, %v352_v19 }
  0xb5   :  { %v372_v20 = vld [vmem:[#allocation4] sm:$0xff] }
  0xb6   :  { %451 = vrsqrt.f32 %v372_v20  ;;  %vm375_vm2 = vcmp.eq.f32.partialorder %v372_v20, inf  ;;  %v378_v23 = vand.u32 2147483648, %v372_v20  ;;  %vm377_vm3 = vcmp.eq.f32.partialorder %v372_v20, 0.0 }
  0xc3   :  { %v452_v21 = vpop.eup %451 }
  0xc4   :  { %v374_v22 = vmul.f32 %v452_v21, %v372_v20 }
  0xc6   :  { %v376_v24 = vsel %vm375_vm2, %v372_v20, %v374_v22 }
  0xc7   :  { %v379_v25 = vsel %vm377_vm3, %v378_v23, %v376_v24 }
  0xc8   :  { %389 = vperm.xlu0 %450, %v379_v25  }
  0xdf   :  { %v122_v26 = vpop.f32.mrf.mxu0 }
  0xe0   :  { %v192_v28 = vpop.f32.mrf.mxu1 }
  0xe1   :  { %v193_v29 = vadd.f32 %v192_v28, %v122_v26  ;;  %v124_v30 = vpop.f32.mrf.mxu0 }
  0xe2   :  { %v194_v31 = vpop.f32.mrf.mxu1 }
  0xe3   :  { %v196_v32 = vadd.f32 %v193_v29, %v55_v27  ;;  %v266_v33 = vpop.f32.mrf.mxu0 }
  0xe4   :  { %v336_v35 = vpop.f32.mrf.mxu1 }
  0xe5   :  { %198 = vst.msk [vmem:[#allocation2] sm:$0xff] %vm40_vm1, %v196_v32  ;;  %v337_v36 = vadd.f32 %v336_v35, %v266_v33  ;;  %v268_v37 = vpop.f32.mrf.mxu0 }
  0xe6   :  { %v338_v38 = vpop.f32.mrf.mxu1 }
  0xe7   :  { %v340_v39 = vadd.f32 %v337_v36, %v199_v34 }
  0xe9   :  { %341 = vst.msk [vmem:[#allocation3] sm:$0xff] %vm40_vm1, %v340_v39 }
  0xec   :  { %v394_v61 = vld [vmem:[#allocation2] sm:$0xff] }
  0xf0   :  { %v363_v43 = vld [vmem:[#allocation3] sm:$0xff] }
  0xf1   :  { %v364_v44 = vsel %vm362_vm4, %v363_v43, 0.0 }
  0xf2   :  { %v365_v45 = vsel %vm40_vm1, %v364_v44, 0.0 }
  0xf3   :  { %v366_v46 = vrot.slane %v365_v45, 4 }
  0xf5   :  { %v367_v47 = vadd.f32 %v366_v46, %v365_v45 }
  0xf7   :  { %v368_v48 = vrot.slane %v367_v47, 2 }
  0xf9   :  { %v369_v49 = vadd.f32 %v368_v48, %v367_v47 }
  0xfb   :  { %v370_v50 = vrot.slane %v369_v49, 1 }
  0xfd   :  { %v371_v51 = vadd.f32 %v370_v50, %v369_v49 }
  0xff   :  { %453 = vrsqrt.f32 %v371_v51  ;;  %vm382_vm5 = vcmp.eq.f32.partialorder %v371_v51, inf  ;;  %v385_v54 = vand.u32 2147483648, %v371_v51  ;;  %vm384_vm6 = vcmp.eq.f32.partialorder %v371_v51, 0.0 }
 0x10c   :  { %v454_v52 = vpop.eup %453 }
 0x10d   :  { %v381_v53 = vmul.f32 %v454_v52, %v371_v51 }
 0x10f   :  { %v383_v55 = vsel %vm382_vm5, %v371_v51, %v381_v53 }
 0x110   :  { %v386_v57 = vsel %vm384_vm6, %v385_v54, %v383_v55 }
 0x143   :  { %v390_v56 = vpop.permute.xlu0 %389 }
 0x144   :  { %v392_v58 = vmul.f32 %v390_v56, %v386_v57 }
 0x146   :  { %v393_v59 = vmax.f32 %v392_v58, 1e-08 }
 0x148   :  { %455 = vrcp.f32 %v393_v59 }
 0x155   :  { %v456_v60 = vpop.eup %455 }
 0x156   :  { %v396_v62 = vmul.f32 %v456_v60, %v394_v61 }
 0x158   :  { %v397_v63 = vmul.f32 14.285714, %v396_v62 }
 0x15a   :  { %v398_v1 = vsel %vm362_vm4, %v397_v63, 0.0  ;;  %v402_v3 = vsel %vm40_vm1, %v397_v63, -inf }
 0x15b   :  { %v399_v2 = vsel %vm40_vm1, %v398_v1, 0.0 }
 0x15c   :  { %400 = vadd.xlane.f32.xlu1 %v399_v2 }
 0x160   :  { %403 = vmax.xlane.f32.xlu1 %v402_v3 }
 0x1e5   :  { %v401_v4 = vpop.xlane.xlu1 %400 }
 0x1e9   :  { %v404_v5 = vpop.xlane.xlu1 %403 }
 0x1ea   :  { %v405_v6 = vmax.f32 %v404_v5, %v401_v4 }
 0x1ec   :  { %v406_v7 = vsub.f32 %v397_v63, %v405_v6  ;;  %v412_v8 = vsub.f32 %v401_v4, %v405_v6  ;;  %v416_v9 = vsub.f32 %v405_v6, %v401_v4 }
 0x1ee   :  { %v407_v10 = vmul.f32 1.442695, %v406_v7  ;;  %v413_v13 = vmul.f32 1.442695, %v412_v8 }
 0x1f0   :  { %457 = vpow2.f32 %v407_v10 }
 0x1f1   :  { %459 = vpow2.f32 %v413_v13 }
 0x1fd   :  { %v458_v11 = vpop.eup %457 }
 0x1fe   :  { %v409_v12 = vsel %vm40_vm1, %v458_v11, 0.0  ;;  %v460_v14 = vpop.eup %459 }
 0x1ff   :  { %410 = vadd.xlane.f32.xlu1 %v409_v12 }
 0x288   :  { %v411_v15 = vpop.xlane.xlu1 %410 }
 0x289   :  { %v415_v16 = vadd.f32 %v460_v14, %v411_v15 }
 0x28b   :  { %461 = vlog2.f32 %v415_v16 }
 0x298   :  { %v462_v17 = vpop.eup %461 }
 0x299   :  { %v418_v18 = vmul.f32 0.6931472, %v462_v17 }
 0x29b   :  { %v419_v19 = vadd.f32 %v418_v18, %v416_v9 }
 0x29d   :  { %v420_v20 = vrot.slane %v419_v19, 4 }
 0x29f   :  { %v421_v21 = vadd.f32 %v420_v20, %v419_v19 }
 0x2a1   :  { %v422_v22 = vrot.slane %v421_v21, 2 }
 0x2a3   :  { %v423_v23 = vadd.f32 %v422_v22, %v421_v21 }
 0x2a5   :  { %v424_v24 = vrot.slane %v423_v23, 1 }
 0x2a7   :  { %v425_v25 = vadd.f32 %v424_v24, %v423_v23 }
 0x2a9   :  { %v426_v26 = vmul.f32 0.125, %v425_v25 }
 0x2ab   :  { %428 = vst.msk [vmem:[#allocation10] sm:$0x1] %vm45_vm7, %v426_v26 }
 0x2ac   :  { %514 = shalt.err (!%p511_p0)
}
 0x2ad   :  { %438 = dma.vmem_to_hbm [thread:$0]  %s436_s1, 16, %s578_s2, [#allocation7]  }
 0x2ae   :  { %527 = dma.done.wait [#allocation7], 16  }
 0x2af   :  { %528 = vsyncadd [#allocation7], 4294967280 }
 0x2b0   :  { %442 = vsyncpa [#allocation6], 1 }
 0x2b1   :  { %443 = vsyncpa [#allocation9], 1 }
 0x2b2   :  { %444 = vsyncpa [#allocation7], 1 }

</bundles_post_ra>
